<compile_context>
chip_gen: v5e
topology: v5e:2x2
jax: 0.10.0
libtpu: 0.0.40
codegen_flags: <defaults>
</compile_context>

<pallas_src>
import functools

import jax
import jax.numpy as jnp
from jax.experimental import pallas as pl
from jax.experimental.pallas import tpu as pltpu


def _positional_slab_copy_kernel(seq_len, table_hbm, out_hbm, sem):
    """Copy the first `seq_len` rows of the embedding table straight to the
    output buffer with a single contiguous HBM->HBM DMA."""
    cp = pltpu.make_async_copy(table_hbm.at[pl.ds(0, seq_len)], out_hbm, sem)
    cp.start()
    cp.wait()


def learnable_positional_forward(embedding_table, position_ids, input_ids):
    """embedding_table: (max_seq_length, D) learnable weight (nn.Embedding.weight)
       position_ids:    (1, max_seq_length) registered arange buffer (kept for
                        API parity with the PyTorch module; since it is a
                        contiguous arange it is not needed for indexing)
       input_ids:       (B, S) batch-first token ids — only shape[1] is used.
       Returns (1, S, D), matching the PyTorch module's forward."""
    del position_ids  # provably arange(max_seq_length); indexing is implicit.
    max_len, dim = embedding_table.shape
    seq_len = input_ids.shape[1]
    if seq_len > max_len:
        raise ValueError(
            f"seq_len={seq_len} exceeds max_seq_length={max_len}; the embedding"
            " table has no rows for those positions."
        )

    out = pl.pallas_call(
        functools.partial(_positional_slab_copy_kernel, seq_len),
        out_shape=jax.ShapeDtypeStruct((seq_len, dim), embedding_table.dtype),
        in_specs=[pl.BlockSpec(memory_space=pl.ANY)],   # raw HBM ref, no auto-DMA
        out_specs=pl.BlockSpec(memory_space=pl.ANY),    # raw HBM ref, filled by DMA
        scratch_shapes=[pltpu.SemaphoreType.DMA(())],
    )(embedding_table)

    return out[None]                                     # (1, S, D)


if __name__ == "__main__":
    # Small shapes consistent with the module: batch=2, seq=16,
    # embedding_dim=128, max_seq_length=64.
    batch, seq = 2, 16
    embedding_dim = 128
    max_seq_length = 64

    key = jax.random.PRNGKey(0)
    k_emb, k_ids = jax.random.split(key)

    # Learnable parameter (torch.nn.Embedding.weight equivalent).
    embedding_table = jax.random.normal(
        k_emb, (max_seq_length, embedding_dim), dtype=jnp.float32)
    # Registered buffer: position_ids = arange(max_seq_length)[None, :].
    position_ids = jnp.arange(max_seq_length, dtype=jnp.int32)[None, :]
    # Dummy token ids — the forward only consumes input_ids.shape[1].
    input_ids = jax.random.randint(k_ids, (batch, seq), 0, 30522, dtype=jnp.int32)

    out = learnable_positional_forward(embedding_table, position_ids, input_ids)
    jax.block_until_ready(out)

    # Pure-JAX reference of the PyTorch forward.
    ref = embedding_table[position_ids[:, :seq]]          # (1, S, D)
    assert out.shape == (1, seq, embedding_dim), out.shape
    assert jnp.allclose(out, ref), "mismatch vs reference embedding lookup"

    # Also exercise an unaligned sequence length (no (8,128) constraint on the
    # DMA path, and no extra HBM traffic unlike the old pre-slice fallback).
    seq_odd = 10
    input_ids_odd = input_ids[:, :seq_odd]
    out_odd = learnable_positional_forward(embedding_table, position_ids, input_ids_odd)
    jax.block_until_ready(out_odd)
    ref_odd = embedding_table[position_ids[:, :seq_odd]]
    assert out_odd.shape == (1, seq_odd, embedding_dim), out_odd.shape
    assert jnp.allclose(out_odd, ref_odd), "mismatch on unaligned seq_len"

    print("KERNEL_OK")
</pallas_src>

<mosaic_0001>
module attributes {stable_mosaic.version = 11 : i64} {
  func.func @_positional_slab_copy_kernel(%arg0: memref<64x128xf32, #tpu.memory_space<any>>, %arg1: memref<16x128xf32, #tpu.memory_space<any>>, %arg2: memref<!tpu.dma_semaphore, #tpu.memory_space<semaphore_mem>>) attributes {dimension_semantics = [], scalar_prefetch = 0 : i64, scratch_operands = 1 : i64, tpu.core_type = #tpu.core_type<tc>} {
    %c0_i32 = arith.constant 0 : i32
    %c0_i32_0 = arith.constant 0 : i32
    %0 = tpu.memref_slice %arg0[%c0_i32, %c0_i32_0] : memref<64x128xf32, #tpu.memory_space<any>> -> memref<16x128xf32, #tpu.memory_space<any>>
    tpu.enqueue_dma source(%0 : memref<16x128xf32, #tpu.memory_space<any>>) target(%arg1 : memref<16x128xf32, #tpu.memory_space<any>>) target_semaphore(%arg2 : memref<!tpu.dma_semaphore, #tpu.memory_space<semaphore_mem>>)
    %c0_i32_1 = arith.constant 0 : i32
    %c0_i32_2 = arith.constant 0 : i32
    %1 = tpu.memref_slice %arg0[%c0_i32_1, %c0_i32_2] : memref<64x128xf32, #tpu.memory_space<any>> -> memref<16x128xf32, #tpu.memory_space<any>>
    tpu.wait_dma2 semaphore(%arg2 : memref<!tpu.dma_semaphore, #tpu.memory_space<semaphore_mem>>) src(%1 : memref<16x128xf32, #tpu.memory_space<any>>) dst(%arg1 : memref<16x128xf32, #tpu.memory_space<any>>)
    return
  }
}

</mosaic_0001>

<bundles_post_ra>
// kernel: tpu_custom_call.1
= control target key start
LH: loop header
LB: loop body
LE: loop exit
PB: predicated region body
PF: predicated region fallthrough
CT: control target
= control target key end

     0   :  { %s32_s12 = smov [#allocation2]   ;;  %s33_s13 = smov [#allocation3]   ;;  %s51_s0 = inlined_call_operand.hbm [shape: f32[64,128], index: 0, kind: input, shape index: {}]   ;;  %s52_s1 = inlined_call_operand.hbm [shape: f32[16,128], index: 1, kind: output, shape index: {}]  }
   0x1   :  { %s10_s8 = sshll.u32 %s51_s0, 4  ;;  %s12_s11 = sshll.u32 %s52_s1, 4  ;;  %s11_s8 = int_to_ptr.hbm [resolvable:$true] %s10_s8  ;;  %s13_s11 = int_to_ptr.hbm [resolvable:$true] %s12_s11 }
   0x2   :  { %s34_s14 = smov 0  }
   0x3   :  { %16 = dma.general %s11_s8, 256, %s13_s11, %s32_s12, %s33_s13, [#allocation4], %s34_s14, 0  }
   0x4   :  { %30 = dma.done.wait [#allocation2], 256 }
   0x5   :  { %31 = vsyncadd [#allocation2], 4294967040 }
   0x6   :  { %20 = vsyncmov [#allocation2] }
   0x9   :  { %s21_s15 = vpop.sfrf %20 }
   0xa   :  { %p26_p0 = scmp.ne.s32.totalorder %s21_s15, 0 }
   0xc   :  { %25 = shalt.err (%p26_p0)  }

</bundles_post_ra>
